<compile_context>
chip_gen: v6e
topology: v6e:2x2x1
jax: 0.10.0
libtpu: 0.0.40
codegen_flags: <defaults>
</compile_context>

<pallas_src>
import functools

import jax
import jax.numpy as jnp
from jax.experimental import pallas as pl
from jax.experimental.pallas import tpu as pltpu


def _cdiv(a, b):
    return -(-a // b)


def _round_up(x, m):
    return _cdiv(x, m) * m


def _is_v7():
    try:
        return "v7" in jax.devices()[0].device_kind.lower()
    except Exception:
        return False


def _vmem_limit(block_bytes, resident_bytes):
    # 2 pipeline buffers for the streamed block + resident tensors + headroom.
    need = 2 * block_bytes + resident_bytes + (2 << 20)
    return int(min(64 << 20, max(16 << 20, need)))


def _fused_pool_head_kernel(h_ref, w_ref, b_ref, o_ref, acc_ref, *,
                            time_tile, t_total, ragged, inv_t):
    """Streaming time-sum with the mean+linear head fused into the last step.

    h_ref: (B, time_tile, H) streamed block (native dtype)
    w_ref: (H, O_pad) f32, b_ref: (1, O_pad) f32   (resident, constant index map)
    o_ref: (B, O_pad) f32 output block (written at the last grid step)
    acc_ref: (B, H) f32 scratch accumulator
    """
    t = pl.program_id(0)

    @pl.when(t == 0)
    def _():
        acc_ref[...] = jnp.zeros_like(acc_ref)

    x = h_ref[...].astype(jnp.float32)
    if ragged:
        # Mask rows past the true time extent (ragged final tile) instead of
        # padding the activation tensor in HBM.
        remaining = t_total - t * time_tile
        row = jax.lax.broadcasted_iota(jnp.int32, x.shape, 1)
        x = jnp.where(row < remaining, x, 0.0)
    acc_ref[...] += jnp.sum(x, axis=1)

    @pl.when(t == pl.num_programs(0) - 1)
    def _():
        pooled = acc_ref[...] * inv_t                     # mean over time
        o_ref[...] = (
            jnp.dot(pooled, w_ref[...], preferred_element_type=jnp.float32)
            + b_ref[...]
        ).astype(o_ref.dtype)


def _split_pool_kernel(h_ref, psum_ref, *, time_tile, tiles_per_split, t_total, ragged):
    """Per-split streaming time-sum (multi-split / dual-TensorCore path).

    h_ref: (B, time_tile, H) streamed block; psum_ref: (B, H) f32 partial sum.
    """
    t = pl.program_id(1)

    @pl.when(t == 0)
    def _():
        psum_ref[...] = jnp.zeros_like(psum_ref)

    x = h_ref[...].astype(jnp.float32)
    if ragged:
        s = pl.program_id(0)
        # `remaining` uses the UNCLAMPED linear tile index, so fully out-of-range
        # tiles (whose DMA window was clamped to the last valid tile) contribute 0.
        remaining = t_total - (s * tiles_per_split + t) * time_tile
        row = jax.lax.broadcasted_iota(jnp.int32, x.shape, 1)
        x = jnp.where(row < remaining, x, 0.0)
    psum_ref[...] += jnp.sum(x, axis=1)


def wav2vec_linear_forward(hidden_states, weight, bias, *, time_tile=None, num_splits=None):
    """Mean-pool over time then linear projection.

    hidden_states: (B, T, H)  wav2vec last_hidden_state, streamed in its NATIVE
                   dtype (pass bf16 from the backbone to halve HBM traffic).
    weight:        (H, O)     transpose of PyTorch nn.Linear weight
    bias:          (O,)
    returns:       (B, O) float32
    """
    B, T, H = hidden_states.shape
    Hw, O = weight.shape
    assert Hw == H

    is_v7 = _is_v7()
    if num_splits is None:
        # v7x has 2 TensorCores/chip -> each streams half the time axis.
        num_splits = 2 if is_v7 else 1
    num_splits = max(1, min(int(num_splits), 2))

    itemsize = hidden_states.dtype.itemsize
    sub = 16 if itemsize == 2 else 8          # bf16 vregs pack [16,128]; f32 [8,128]

    # Fixed, moderate streamed block (~8 MiB): saturates HBM BW while keeping
    # many grid steps for DMA/compute overlap, and leaves plenty of headroom on
    # v7x's 64 MiB VMEM.
    if time_tile is None:
        target_block_bytes = 8 * 1024 * 1024
        rows = max(sub, (target_block_bytes // max(1, B * H * itemsize)) // sub * sub)
        time_tile = min(rows, _round_up(_cdiv(T, num_splits), sub))
    else:
        time_tile = max(sub, _round_up(int(time_tile), sub))
    if time_tile >= T:
        time_tile = T                         # single full-time block (block == full dim)

    tiles_total = _cdiv(T, time_tile)
    tiles_per_split = _cdiv(tiles_total, num_splits)
    ragged = (num_splits * tiles_per_split * time_tile != T)
    block_bytes = B * time_tile * H * itemsize

    if num_splits == 1:
        # ---- single pallas_call: streaming sum + fused mean/matmul/bias head ----
        o_pad = _round_up(O, 128)             # lane-dense output slab
        w_p = weight.astype(jnp.float32)
        b_p = bias.reshape(1, O).astype(jnp.float32)
        if o_pad != O:
            w_p = jnp.pad(w_p, ((0, 0), (0, o_pad - O)))
            b_p = jnp.pad(b_p, ((0, 0), (0, o_pad - O)))

        resident = (B * H + 2 * (H * o_pad + o_pad) + B * o_pad) * 4
        out = pl.pallas_call(
            functools.partial(_fused_pool_head_kernel, time_tile=time_tile,
                              t_total=T, ragged=ragged, inv_t=1.0 / T),
            out_shape=jax.ShapeDtypeStruct((B, o_pad), jnp.float32),
            grid_spec=pltpu.PrefetchScalarGridSpec(
                num_scalar_prefetch=0,
                grid=(tiles_total,),
                in_specs=[
                    # NOTE: could also sweep pipeline_mode=pl.Buffered(3) here.
                    pl.BlockSpec((B, time_tile, H), lambda t: (0, t, 0)),
                    pl.BlockSpec((H, o_pad), lambda t: (0, 0)),
                    pl.BlockSpec((1, o_pad), lambda t: (0, 0)),
                ],
                out_specs=pl.BlockSpec((B, o_pad), lambda t: (0, 0)),
                scratch_shapes=[pltpu.VMEM((B, H), jnp.float32)],
            ),
            compiler_params=pltpu.CompilerParams(
                dimension_semantics=("arbitrary",),
                vmem_limit_bytes=_vmem_limit(block_bytes, resident),
            ),
        )(hidden_states, w_p, b_p)
        return out[:, :O] if o_pad != O else out

    # ---- multi-split path (v7x: one split per TensorCore via CORE_PARALLEL) ----
    split_sem = pltpu.CORE_PARALLEL if is_v7 else "arbitrary"

    def h_index(s, t):
        lin = s * tiles_per_split + t
        lin = jnp.minimum(lin, tiles_total - 1)   # keep the DMA window in bounds
        return (0, lin, 0)

    resident = 2 * B * H * 4
    psums = pl.pallas_call(
        functools.partial(_split_pool_kernel, time_tile=time_tile,
                          tiles_per_split=tiles_per_split, t_total=T, ragged=ragged),
        out_shape=jax.ShapeDtypeStruct((num_splits, B, H), jnp.float32),
        grid_spec=pltpu.PrefetchScalarGridSpec(
            num_scalar_prefetch=0,
            grid=(num_splits, tiles_per_split),
            in_specs=[pl.BlockSpec((B, time_tile, H), h_index)],
            out_specs=pl.BlockSpec((None, B, H), lambda s, t: (s, 0, 0)),
        ),
        compiler_params=pltpu.CompilerParams(
            dimension_semantics=(split_sem, "arbitrary"),
            vmem_limit_bytes=_vmem_limit(block_bytes, resident),
        ),
    )(hidden_states)

    # Tiny epilogue (B rows): combine per-core partials, mean-scale, matmul + bias.
    # Performance-irrelevant -> plain JAX, no second custom call.
    pooled = jnp.sum(psums, axis=0) * (1.0 / T)
    return pooled @ weight.astype(jnp.float32) + bias.astype(jnp.float32)


if __name__ == "__main__":
    # Small, deterministic shapes: batch=2, time frames=8, hidden=32, out_dim=16.
    B, T, H, OUT = 2, 8, 32, 16
    key = jax.random.PRNGKey(0)
    k_feat, k_w, k_b = jax.random.split(key, 3)

    # Deterministic surrogate for wav2vec.last_hidden_state (see TODO above).
    hidden_states = jax.random.normal(k_feat, (B, T, H), dtype=jnp.float32)

    # nn.Linear(hidden_size, out_dim) parameters (weight stored transposed: (H, OUT)).
    weight = jax.random.normal(k_w, (H, OUT), dtype=jnp.float32) * 0.02
    bias = jax.random.normal(k_b, (OUT,), dtype=jnp.float32) * 0.02

    # Exact f32 reference: mean pool over time, then linear.
    ref = jnp.mean(hidden_states, axis=1) @ weight + bias

    # Default auto-tuned path (fused single-call on 1-TC parts, split on v7x).
    out = jax.block_until_ready(wav2vec_linear_forward(hidden_states, weight, bias))
    assert out.shape == (B, OUT)
    assert jnp.allclose(out, ref, atol=1e-4, rtol=1e-4)

    # Explicit multi-split path: exercises the per-split partial sums, the
    # clamped+masked fully-out-of-range tile of the second split, and the
    # plain-JAX combine epilogue.
    out2 = jax.block_until_ready(
        wav2vec_linear_forward(hidden_states, weight, bias, time_tile=8, num_splits=2))
    assert out2.shape == (B, OUT)
    assert jnp.allclose(out2, ref, atol=1e-4, rtol=1e-4)

    # Ragged single-split path: T not a multiple of the tile -> in-kernel masking.
    T2 = 13
    hs2 = jax.random.normal(k_feat, (B, T2, H), dtype=jnp.float32)
    ref2 = jnp.mean(hs2, axis=1) @ weight + bias
    out3 = jax.block_until_ready(
        wav2vec_linear_forward(hs2, weight, bias, time_tile=8, num_splits=1))
    assert out3.shape == (B, OUT)
    assert jnp.allclose(out3, ref2, atol=1e-4, rtol=1e-4)

    print("KERNEL_OK")
</pallas_src>

<mosaic_0001>
module attributes {stable_mosaic.version = 11 : i64} {
  func.func @_fused_pool_head_kernel(%arg0: i32, %arg1: memref<2x8x32xf32, #tpu.memory_space<vmem>>, %arg2: memref<32x128xf32, #tpu.memory_space<vmem>>, %arg3: memref<1x128xf32, #tpu.memory_space<vmem>>, %arg4: memref<2x128xf32, #tpu.memory_space<vmem>>, %arg5: memref<2x32xf32, #tpu.memory_space<vmem>>) attributes {dimension_semantics = [#tpu.dimension_semantics<arbitrary>], iteration_bounds = array<i64: 1>, scalar_prefetch = 0 : i64, scratch_operands = 1 : i64, tpu.core_type = #tpu.core_type<tc>, window_params = [{transform_indices = @transform_0, window_bounds = array<i64: 2, 8, 32>}, {pipeline_mode = #tpu.pipeline_mode<synchronous>, transform_indices = @transform_1, window_bounds = array<i64: 32, 128>}, {pipeline_mode = #tpu.pipeline_mode<synchronous>, transform_indices = @transform_2, window_bounds = array<i64: 1, 128>}, {pipeline_mode = #tpu.pipeline_mode<synchronous>, transform_indices = @transform_3, window_bounds = array<i64: 2, 128>}]} {
    %c0_i32 = arith.constant 0 : i32
    %0 = arith.cmpi eq, %arg0, %c0_i32 : i32
    %1 = arith.extui %0 : i1 to i32
    %c0_i32_0 = arith.constant 0 : i32
    %2 = arith.cmpi ne, %1, %c0_i32_0 : i32
    scf.if %2 {
      %cst_9 = arith.constant 0.000000e+00 : f32
      %11 = vector.broadcast %cst_9 : f32 to vector<2x32xf32>
      %c0_10 = arith.constant 0 : index
      %c0_11 = arith.constant 0 : index
      %12 = vector.load %arg5[%c0_10, %c0_11] : memref<2x32xf32, #tpu.memory_space<vmem>>, vector<2x32xf32>
      tpu.vector_store %arg5[%c0_10, %c0_11], %11 {strides = array<i32>} : memref<2x32xf32, #tpu.memory_space<vmem>>, vector<2x32xf32>,
    } else {
    }
    %c0 = arith.constant 0 : index
    %c0_1 = arith.constant 0 : index
    %c0_2 = arith.constant 0 : index
    %3 = vector.load %arg1[%c0, %c0_1, %c0_2] : memref<2x8x32xf32, #tpu.memory_space<vmem>>, vector<2x8x32xf32>
    %c0_3 = arith.constant 0 : index
    %c0_4 = arith.constant 0 : index
    %4 = vector.load %arg5[%c0_3, %c0_4] : memref<2x32xf32, #tpu.memory_space<vmem>>, vector<2x32xf32>
    %cst = arith.constant dense<0.000000e+00> : vector<2x32xf32>
    %5 = vector.multi_reduction <add>, %3, %cst [1] : vector<2x8x32xf32> to vector<2x32xf32>
    %6 = arith.addf %4, %5 : vector<2x32xf32>
    %c0_5 = arith.constant 0 : index
    %c0_6 = arith.constant 0 : index
    %7 = vector.load %arg5[%c0_5, %c0_6] : memref<2x32xf32, #tpu.memory_space<vmem>>, vector<2x32xf32>
    tpu.vector_store %arg5[%c0_5, %c0_6], %6 {strides = array<i32>} : memref<2x32xf32, #tpu.memory_space<vmem>>, vector<2x32xf32>,
    %c0_i32_7 = arith.constant 0 : i32
    %8 = arith.cmpi eq, %arg0, %c0_i32_7 : i32
    %9 = arith.extui %8 : i1 to i32
    %c0_i32_8 = arith.constant 0 : i32
    %10 = arith.cmpi ne, %9, %c0_i32_8 : i32
    scf.if %10 {
      %c0_9 = arith.constant 0 : index
      %c0_10 = arith.constant 0 : index
      %11 = vector.load %arg5[%c0_9, %c0_10] : memref<2x32xf32, #tpu.memory_space<vmem>>, vector<2x32xf32>
      %cst_11 = arith.constant 1.250000e-01 : f32
      %12 = vector.broadcast %cst_11 : f32 to vector<2x32xf32>
      %13 = arith.mulf %11, %12 : vector<2x32xf32>
      %c0_12 = arith.constant 0 : index
      %c0_13 = arith.constant 0 : index
      %14 = vector.load %arg2[%c0_12, %c0_13] : memref<32x128xf32, #tpu.memory_space<vmem>>, vector<32x128xf32>
      %cst_14 = arith.constant dense<0.000000e+00> : vector<2x128xf32>
      %15 = tpu.matmul %13, %14, %cst_14 {dimension_numbers = #tpu.dot_dimension_numbers<[1], [0], [0], [1], [0, 0, 1, 1], [], []>} : vector<2x32xf32>, vector<32x128xf32>, vector<2x128xf32> -> vector<2x128xf32>
      %c0_15 = arith.constant 0 : index
      %c0_16 = arith.constant 0 : index
      %16 = vector.load %arg3[%c0_15, %c0_16] : memref<1x128xf32, #tpu.memory_space<vmem>>, vector<1x128xf32>
      %17 = vector.broadcast %16 : vector<1x128xf32> to vector<2x128xf32>
      %18 = arith.addf %15, %17 : vector<2x128xf32>
      %c0_17 = arith.constant 0 : index
      %c0_18 = arith.constant 0 : index
      %19 = vector.load %arg4[%c0_17, %c0_18] : memref<2x128xf32, #tpu.memory_space<vmem>>, vector<2x128xf32>
      tpu.vector_store %arg4[%c0_17, %c0_18], %18 {strides = array<i32>} : memref<2x128xf32, #tpu.memory_space<vmem>>, vector<2x128xf32>,
    } else {
    }
    return
  }
  func.func @transform_0(%arg0: i32) -> (i32, i32, i32) {
    %c0_i32 = arith.constant 0 : i32
    %c0_i32_0 = arith.constant 0 : i32
    %c0_i32_1 = arith.constant 0 : i32
    return %c0_i32, %arg0, %c0_i32_0 : i32, i32, i32
  }
  func.func @transform_1(%arg0: i32) -> (i32, i32) {
    %c0_i32 = arith.constant 0 : i32
    %c0_i32_0 = arith.constant 0 : i32
    %c0_i32_1 = arith.constant 0 : i32
    return %c0_i32, %c0_i32_0 : i32, i32
  }
  func.func @transform_2(%arg0: i32) -> (i32, i32) {
    %c0_i32 = arith.constant 0 : i32
    %c0_i32_0 = arith.constant 0 : i32
    %c0_i32_1 = arith.constant 0 : i32
    return %c0_i32, %c0_i32_0 : i32, i32
  }
  func.func @transform_3(%arg0: i32) -> (i32, i32) {
    %c0_i32 = arith.constant 0 : i32
    %c0_i32_0 = arith.constant 0 : i32
    %c0_i32_1 = arith.constant 0 : i32
    return %c0_i32, %c0_i32_0 : i32, i32
  }
}

</mosaic_0001>

<bundles_post_ra>
// kernel: tpu_custom_call.1
= control target key start
LH: loop header
LB: loop body
LE: loop exit
PB: predicated region body
PF: predicated region fallthrough
CT: control target
= control target key end

     0   :  { %8 = vsyncpa [#allocation4], 0  ;;  %s316_s0 = inlined_call_operand.hbm [shape: f32[2,8,32], index: 0, kind: input, shape index: {}]   ;;  %s317_s1 = inlined_call_operand.hbm [shape: f32[32,128], index: 1, kind: input, shape index: {}]   ;;  %s318_s2 = inlined_call_operand.vmem [shape: f32[1,128], index: 2, kind: input, shape index: {}]   ;;  %s319_s3 = inlined_call_operand.hbm [shape: f32[2,128], index: 3, kind: output, shape index: {}]  }
   0x1   :  { %9 = vsyncpa [#allocation7], 0 }
   0x2   :  { %10 = vsyncpa [#allocation5], 0  ;;  %s272_s12 = smov [#allocation3]  }
   0x3   :  { %s16_s13 = sshll.u32 %s272_s12, 4  ;;  %s17_s13 = int_to_ptr.vmem [resolvable:$true] %s16_s13 }
   0x4   :  { %s214_s14 = scalar_lea.vmem %s17_s13, 256  ;;  %p219_p1 = scmp.lt.s32.totalorder %s17_s13, %s17_s13 }
   0x5   :  { %p215_p0 = scmp.ne.s32.totalorder %s17_s13, %s214_s14  ;;  %p220_p2 = scmp.lt.s32.totalorder %s214_s14, %s214_s14 }
   0x7   :  { %p221_p3 = por %p220_p2, %p219_p1 }
   0x9   :  { %p222_p4 = pnand %p221_p3, %p215_p0 }
   0xb   :  { %225 = shalt.err (!%p222_p4)
}
   0xc   :  { %s273_s15 = smov 128   ;;  %s274_s16 = smov 8  }
   0xd   :  { %22 = dma.hbm_to_vmem [thread:$0]  %s316_s0, 256, %s17_s13, [#allocation4], %s273_s15, %s273_s15, %s274_s16  }
   0xe   :  { %s275_s19 = smov [#allocation6]  }
   0xf   :  { %s28_s20 = sshll.u32 %s275_s19, 4  ;;  %s29_s20 = int_to_ptr.vmem [resolvable:$true] %s28_s20 }
  0x10   :  { %s234_s21 = scalar_lea.vmem %s29_s20, 512  ;;  %p239_p6 = scmp.lt.s32.totalorder %s29_s20, %s29_s20 }
  0x11   :  { %p235_p5 = scmp.ne.s32.totalorder %s29_s20, %s234_s21  ;;  %p240_p7 = scmp.lt.s32.totalorder %s234_s21, %s234_s21 }
  0x13   :  { %p241_p8 = por %p240_p7, %p239_p6 }
  0x15   :  { %p242_p9 = pnand %p241_p8, %p235_p5 }
  0x17   :  { %245 = shalt.err (!%p242_p9)
}
  0x18   :  { %34 = dma.hbm_to_vmem [thread:$0]  %s317_s1, 512, %s29_s20, [#allocation7], %s273_s15, %s273_s15, %s274_s16  }
  0x19   :  { %266 = dma.done.wait [#allocation4], 256  }
  0x1a   :  { %267 = vsyncadd [#allocation4], 4294967040 }
  0x1b   :  { %268 = dma.done.wait [#allocation7], 512  }
  0x1c   :  { %269 = vsyncadd [#allocation7], 4294966784  ;;  %vm47_vm0 = vcmask 254976   ;;  %v276_v0 = vmov 0.0   ;;  %vm277_vm1 = vmmov 0   ;;  %vm52_vm2 = vcmask 261120  }
  0x1d   :  { %48 = vst.msk [vmem:[#allocation2] sm:$0x3] %vm47_vm0, %v276_v0  ;;  %188 = vmatprep.subr.mxu0 %v276_v0  ;;  %196 = vmatprep.mubr.msk.f32.mxu0 %vm277_vm1, %v276_v0  ;;  %v83_v1 = vld [vmem:[#allocation6 + $0x18] sm:$0xff]  ;;  %v82_v2 = vld [vmem:[#allocation6 + $0x10] sm:$0xff]  ;;  %v81_v5 = vld [vmem:[#allocation6 + $0x8] sm:$0xff]  ;;  %vm69_vm3 = vcmask 1041409  }
  0x1e   :  { %189 = vmatpush3.msra.mxu0 %v83_v1  ;;  %v49_v3 = vld [vmem:[#allocation3] sm:$0xff]  ;;  %v50_v4 = vld [vmem:[#allocation3 + $0x8] sm:$0xff]  ;;  %v80_v10 = vld [vmem:[#allocation6] sm:$0xff]  ;;  %s278_s24 = smov [#allocation8]  }
  0x1f   :  { %190 = vmatprep.subr.mxu0 %v276_v0  ;;  %v53_v6 = vsel %vm52_vm2, %v49_v3, 0.0  ;;  %v60_v7 = vsel %vm52_vm2, %v50_v4, 0.0  ;;  %v181_v26 = vld [vmem:[%s318_s2] ss:$0 sm:$0xff]  ;;  %s171_s25 = sshll.u32 %s278_s24, 4  ;;  %s172_s25 = int_to_ptr.vmem [resolvable:$true] %s171_s25 }
  0x20   :  { %191 = vmatpush3.msra.mxu0 %v82_v2  ;;  %v54_v8 = vrot.slane %v53_v6, 4  ;;  %v61_v9 = vrot.slane %v60_v7, 4  ;;  %s246_s26 = scalar_lea.vmem %s172_s25, 32  ;;  %p251_p11 = scmp.lt.s32.totalorder %s172_s25, %s172_s25 }
  0x21   :  { %192 = vmatprep.subr.mxu0 %v276_v0  ;;  %p247_p10 = scmp.ne.s32.totalorder %s172_s25, %s246_s26  ;;  %p252_p12 = scmp.lt.s32.totalorder %s246_s26, %s246_s26 }
  0x22   :  { %193 = vmatpush3.msra.mxu0 %v81_v5  ;;  %v55_v11 = vadd.f32 %v54_v8, %v53_v6  ;;  %v62_v12 = vadd.f32 %v61_v9, %v60_v7 }
  0x23   :  { %194 = vmatprep.subr.mxu0 %v276_v0  ;;  %p253_p13 = por %p252_p12, %p251_p11 }
  0x24   :  { %195 = vmatpush3.msra.mxu0 %v80_v10  ;;  %v56_v13 = vrot.slane %v55_v11, 2  ;;  %v63_v14 = vrot.slane %v62_v12, 2  ;;  %v51_v19 = vld [vmem:[#allocation2] sm:$0x3] }
  0x25   :  { %p254_p0 = pnand %p253_p13, %p247_p10 }
  0x26   :  { %v57_v15 = vadd.f32 %v56_v13, %v55_v11  ;;  %v64_v16 = vadd.f32 %v63_v14, %v62_v12 }
  0x28   :  { %v58_v17 = vrot.slane %v57_v15, 1  ;;  %v65_v18 = vrot.slane %v64_v16, 1 }
  0x2a   :  { %v59_v20 = vadd.f32 %v58_v17, %v57_v15  ;;  %v66_v21 = vadd.f32 %v65_v18, %v64_v16 }
  0x2c   :  { %v70_v22 = vsel %vm69_vm3, %v66_v21, %v59_v20 }
  0x2d   :  { %v72_v23 = vadd.f32 %v70_v22, %v51_v19 }
  0x2f   :  { %74 = vst.msk [vmem:[#allocation2] sm:$0x3] %vm47_vm0, %v72_v23 }
  0x36   :  { %v78_v24 = vld [vmem:[#allocation2] sm:$0x3] }
  0x37   :  { %v79_v25 = vmul.f32 0.125, %v78_v24 }
  0x39   :  { %197 = vmatmul.mubr.msk.f32.vlgmr.msra.gmra.mxu0 %vm52_vm2, %v79_v25 }
  0xf9   :  { %v160_v27 = vpop.f32.mrf.mxu0 }
  0xfa   :  { %v161_v28 = vadd.f32 %v181_v26, %v160_v27 }
  0xfb   :  { %v198_v29 = vpop.f32.mrf.mxu0 }
  0xfc   :  { %164 = vst [vmem:[#allocation8] sm:$0x3] %v161_v28 }
  0xfd   :  { %257 = shalt.err (!%p254_p0)
}
  0xfe   :  { %174 = dma.vmem_to_hbm [thread:$0]  %s172_s25, 32, %s319_s3, [#allocation5]  }
  0xff   :  { %270 = dma.done.wait [#allocation5], 32  }
 0x100   :  { %271 = vsyncadd [#allocation5], 4294967264 }
 0x101   :  { %178 = vsyncpa [#allocation4], 1 }
 0x102   :  { %179 = vsyncpa [#allocation7], 1 }
 0x103   :  { %180 = vsyncpa [#allocation5], 1 }

</bundles_post_ra>
